<compile_context>
chip_gen: v6e
topology: v6e:2x2x1
jax: 0.10.0
libtpu: 0.0.40
codegen_flags: <defaults>
</compile_context>

<pallas_src>
import jax
import jax.numpy as jnp
from jax.experimental import pallas as pl
from jax.experimental.pallas import tpu as pltpu


def _mlp_kernel(x_ref, w1_ref, b1_ref, w2_ref, b2_ref, o_ref):
    # Hot path: two MXU matmuls; bias add on VPU, tanh on EUP (free slot).
    x = x_ref[...]                                          # (TM, D_in)
    h = jnp.dot(x, w1_ref[...], preferred_element_type=jnp.float32)
    h = jnp.tanh(h + b1_ref[...])                           # f32, (TM, H_pad)
    y = jnp.dot(h.astype(w2_ref.dtype), w2_ref[...],
                preferred_element_type=jnp.float32)
    o_ref[...] = (y + b2_ref[...]).astype(o_ref.dtype)


def ontop_modeler_forward(x, w1, b1, w2, b2, *, tm=512):
    """x: (B, D_in); w1: (D_in, H); b1: (H,); w2: (H, out); b2: (out,)."""
    B, D_in = x.shape
    H = w1.shape[1]
    out_dim = w2.shape[1]
    dtype = x.dtype

    # --- Pad hidden dim to a multiple of 128 lanes (exact zeros => identical result).
    H_pad = ((H + 127) // 128) * 128
    w1p = jnp.zeros((D_in, H_pad), w1.dtype).at[:, :H].set(w1)
    b1p = jnp.zeros((1, H_pad), jnp.float32).at[0, :H].set(b1.astype(jnp.float32))
    w2p = jnp.zeros((H_pad, out_dim), w2.dtype).at[:H, :].set(w2)
    b2p = b2.astype(jnp.float32).reshape(1, out_dim)

    # --- Batch tile: multiple of 8 sublanes, capped at `tm`; pad B to a tile multiple.
    TM = min(tm, ((B + 7) // 8) * 8)
    B_pad = ((B + TM - 1) // TM) * TM
    xp = x
    if B_pad != B:
        xp = jnp.zeros((B_pad, D_in), dtype).at[:B].set(x)

    grid = (B_pad // TM,)

    itemsize = jnp.dtype(dtype).itemsize
    cost = pl.CostEstimate(
        flops=2 * B_pad * (D_in * H_pad + H_pad * out_dim),
        transcendentals=B_pad * H_pad,
        bytes_accessed=(
            xp.size * xp.dtype.itemsize
            + w1p.size * w1p.dtype.itemsize
            + b1p.size * b1p.dtype.itemsize
            + w2p.size * w2p.dtype.itemsize
            + b2p.size * b2p.dtype.itemsize
            + B_pad * out_dim * itemsize
        ),
    )

    out = pl.pallas_call(
        _mlp_kernel,
        out_shape=jax.ShapeDtypeStruct((B_pad, out_dim), dtype),
        grid=grid,
        in_specs=[
            pl.BlockSpec((TM, D_in), lambda i: (i, 0)),        # x: tiled over batch
            pl.BlockSpec((D_in, H_pad), lambda i: (0, 0)),     # w1: VMEM-resident
            pl.BlockSpec((1, H_pad), lambda i: (0, 0)),        # b1: VMEM-resident
            pl.BlockSpec((H_pad, out_dim), lambda i: (0, 0)),  # w2: VMEM-resident
            pl.BlockSpec((1, out_dim), lambda i: (0, 0)),      # b2: VMEM-resident
        ],
        out_specs=pl.BlockSpec((TM, out_dim), lambda i: (i, 0)),
        compiler_params=pltpu.CompilerParams(
            dimension_semantics=("parallel",),
        ),
        cost_estimate=cost,
    )(xp, w1p, b1p, w2p, b2p)

    return out[:B] if B_pad != B else out


def _torch_like_linear_init(key, in_features, out_features, dtype=jnp.float32):
    # Deterministic init mimicking nn.Linear: U(-1/sqrt(fan_in), 1/sqrt(fan_in)).
    kw, kb = jax.random.split(key)
    bound = 1.0 / (in_features ** 0.5)
    # Stored transposed: (in_features, out_features) so the kernel does x @ W.
    w = jax.random.uniform(kw, (in_features, out_features), dtype,
                           minval=-bound, maxval=bound)
    b = jax.random.uniform(kb, (out_features,), dtype,
                           minval=-bound, maxval=bound)
    return w, b


if __name__ == "__main__":
    key = jax.random.PRNGKey(0)
    k_x, k_l1, k_l2 = jax.random.split(key, 3)

    batch = 8
    input_size = 32
    hidden_nodes = 64

    x = jax.random.normal(k_x, (batch, input_size), jnp.float32)
    w1, b1 = _torch_like_linear_init(k_l1, input_size, hidden_nodes)
    w2, b2 = _torch_like_linear_init(k_l2, hidden_nodes, 2)

    out = ontop_modeler_forward(x, w1, b1, w2, b2)
    out = jax.block_until_ready(out)

    # Reference check (plain JAX) for the same semantics as the PyTorch forward.
    ref = jnp.tanh(x @ w1 + b1) @ w2 + b2
    assert out.shape == (batch, 2)
    assert jnp.allclose(out, ref, atol=1e-5, rtol=1e-5)

    print("KERNEL_OK")
</pallas_src>

<mosaic_0001>
module attributes {stable_mosaic.version = 11 : i64} {
  func.func @_mlp_kernel(%arg0: i32, %arg1: memref<8x32xf32, #tpu.memory_space<vmem>>, %arg2: memref<32x128xf32, #tpu.memory_space<vmem>>, %arg3: memref<1x128xf32, #tpu.memory_space<vmem>>, %arg4: memref<128x2xf32, #tpu.memory_space<vmem>>, %arg5: memref<1x2xf32, #tpu.memory_space<vmem>>, %arg6: memref<8x2xf32, #tpu.memory_space<vmem>>) attributes {dimension_semantics = [#tpu.dimension_semantics<parallel>], iteration_bounds = array<i64: 1>, scalar_prefetch = 0 : i64, scratch_operands = 0 : i64, tpu.core_type = #tpu.core_type<tc>, window_params = [{transform_indices = @transform_0, window_bounds = array<i64: 8, 32>}, {pipeline_mode = #tpu.pipeline_mode<synchronous>, transform_indices = @transform_1, window_bounds = array<i64: 32, 128>}, {pipeline_mode = #tpu.pipeline_mode<synchronous>, transform_indices = @transform_2, window_bounds = array<i64: 1, 128>}, {pipeline_mode = #tpu.pipeline_mode<synchronous>, transform_indices = @transform_3, window_bounds = array<i64: 128, 2>}, {pipeline_mode = #tpu.pipeline_mode<synchronous>, transform_indices = @transform_4, window_bounds = array<i64: 1, 2>}, {transform_indices = @transform_5, window_bounds = array<i64: 8, 2>}]} {
    %c0 = arith.constant 0 : index
    %c0_0 = arith.constant 0 : index
    %0 = vector.load %arg1[%c0, %c0_0] : memref<8x32xf32, #tpu.memory_space<vmem>>, vector<8x32xf32>
    %c0_1 = arith.constant 0 : index
    %c0_2 = arith.constant 0 : index
    %1 = vector.load %arg2[%c0_1, %c0_2] : memref<32x128xf32, #tpu.memory_space<vmem>>, vector<32x128xf32>
    %cst = arith.constant dense<0.000000e+00> : vector<8x128xf32>
    %2 = tpu.matmul %0, %1, %cst {dimension_numbers = #tpu.dot_dimension_numbers<[1], [0], [0], [1], [0, 0, 1, 1], [], []>} : vector<8x32xf32>, vector<32x128xf32>, vector<8x128xf32> -> vector<8x128xf32>
    %c0_3 = arith.constant 0 : index
    %c0_4 = arith.constant 0 : index
    %3 = vector.load %arg3[%c0_3, %c0_4] : memref<1x128xf32, #tpu.memory_space<vmem>>, vector<1x128xf32>
    %4 = vector.broadcast %3 : vector<1x128xf32> to vector<8x128xf32>
    %5 = arith.addf %2, %4 : vector<8x128xf32>
    %6 = math.tanh %5 : vector<8x128xf32>
    %c0_5 = arith.constant 0 : index
    %c0_6 = arith.constant 0 : index
    %7 = vector.load %arg4[%c0_5, %c0_6] : memref<128x2xf32, #tpu.memory_space<vmem>>, vector<128x2xf32>
    %cst_7 = arith.constant dense<0.000000e+00> : vector<8x2xf32>
    %8 = tpu.matmul %6, %7, %cst_7 {dimension_numbers = #tpu.dot_dimension_numbers<[1], [0], [0], [1], [0, 0, 1, 1], [], []>} : vector<8x128xf32>, vector<128x2xf32>, vector<8x2xf32> -> vector<8x2xf32>
    %c0_8 = arith.constant 0 : index
    %c0_9 = arith.constant 0 : index
    %9 = vector.load %arg5[%c0_8, %c0_9] : memref<1x2xf32, #tpu.memory_space<vmem>>, vector<1x2xf32>
    %10 = vector.broadcast %9 : vector<1x2xf32> to vector<8x2xf32>
    %11 = arith.addf %8, %10 : vector<8x2xf32>
    %c0_10 = arith.constant 0 : index
    %c0_11 = arith.constant 0 : index
    %12 = vector.load %arg6[%c0_10, %c0_11] : memref<8x2xf32, #tpu.memory_space<vmem>>, vector<8x2xf32>
    tpu.vector_store %arg6[%c0_10, %c0_11], %11 {strides = array<i32>} : memref<8x2xf32, #tpu.memory_space<vmem>>, vector<8x2xf32>,
    return
  }
  func.func @transform_0(%arg0: i32) -> (i32, i32) {
    %c0_i32 = arith.constant 0 : i32
    %c0_i32_0 = arith.constant 0 : i32
    return %arg0, %c0_i32 : i32, i32
  }
  func.func @transform_1(%arg0: i32) -> (i32, i32) {
    %c0_i32 = arith.constant 0 : i32
    %c0_i32_0 = arith.constant 0 : i32
    %c0_i32_1 = arith.constant 0 : i32
    return %c0_i32, %c0_i32_0 : i32, i32
  }
  func.func @transform_2(%arg0: i32) -> (i32, i32) {
    %c0_i32 = arith.constant 0 : i32
    %c0_i32_0 = arith.constant 0 : i32
    %c0_i32_1 = arith.constant 0 : i32
    return %c0_i32, %c0_i32_0 : i32, i32
  }
  func.func @transform_3(%arg0: i32) -> (i32, i32) {
    %c0_i32 = arith.constant 0 : i32
    %c0_i32_0 = arith.constant 0 : i32
    %c0_i32_1 = arith.constant 0 : i32
    return %c0_i32, %c0_i32_0 : i32, i32
  }
  func.func @transform_4(%arg0: i32) -> (i32, i32) {
    %c0_i32 = arith.constant 0 : i32
    %c0_i32_0 = arith.constant 0 : i32
    %c0_i32_1 = arith.constant 0 : i32
    return %c0_i32, %c0_i32_0 : i32, i32
  }
  func.func @transform_5(%arg0: i32) -> (i32, i32) {
    %c0_i32 = arith.constant 0 : i32
    %c0_i32_0 = arith.constant 0 : i32
    return %arg0, %c0_i32 : i32, i32
  }
}

</mosaic_0001>

<bundles_post_ra>
// kernel: tpu_custom_call.1
= control target key start
LH: loop header
LB: loop body
LE: loop exit
PB: predicated region body
PF: predicated region fallthrough
CT: control target
= control target key end

     0   :  { %v281_v0 = vmov 0.0   ;;  %vm282_vm0 = vmmov 0   ;;  %vm32_vm1 = vcmask 261120   ;;  %vm200_vm2 = vcmask 15360   ;;  %s409_s1 = inlined_call_operand.vmem [shape: f32[32,128], index: 1, kind: input, shape index: {}]   ;;  %s410_s3 = inlined_call_operand.vmem [shape: f32[128,2], index: 3, kind: input, shape index: {}]   ;;  %s411_s0 = inlined_call_operand.vmem [shape: f32[8,32], index: 0, kind: input, shape index: {}]   ;;  %s412_s2 = inlined_call_operand.vmem [shape: f32[1,128], index: 2, kind: input, shape index: {}]   ;;  %s413_s4 = inlined_call_operand.vmem [shape: f32[1,2], index: 4, kind: input, shape index: {}]   ;;  %s414_s5 = inlined_call_operand.vmem [shape: f32[8,2], index: 5, kind: output, shape index: {}]  }
   0x1   :  { %231 = vmatprep.subr.mxu0 %v281_v0  ;;  %v24_v1 = vld [vmem:[%s409_s1 + $0x18] sm:$0xff]  ;;  %v23_v2 = vld [vmem:[%s409_s1 + $0x10] sm:$0xff]  ;;  %239 = vmatprep.mubr.msk.f32.mxu0 %vm282_vm0, %v281_v0  ;;  %v22_v4 = vld [vmem:[%s409_s1 + $0x8] sm:$0xff] }
   0x2   :  { %232 = vmatpush3.msra.mxu0 %v24_v1  ;;  %242 = vmatprep.subr.mxu1 %v281_v0  ;;  %v122_v3 = vld [vmem:[%s410_s3 + $0x78] sm:$0xff]  ;;  %v121_v5 = vld [vmem:[%s410_s3 + $0x70] sm:$0xff]  ;;  %v120_v6 = vld [vmem:[%s410_s3 + $0x68] sm:$0xff] }
   0x3   :  { %233 = vmatprep.subr.mxu0 %v281_v0  ;;  %243 = vmatpush3.msra.mxu1 %v122_v3  ;;  %v21_v7 = vld [vmem:[%s409_s1] sm:$0xff]  ;;  %v118_v10 = vld [vmem:[%s410_s3 + $0x58] sm:$0xff]  ;;  %v117_v11 = vld [vmem:[%s410_s3 + $0x50] sm:$0xff] }
   0x4   :  { %234 = vmatpush3.msra.mxu0 %v23_v2  ;;  %244 = vmatprep.subr.mxu1 %v281_v0  ;;  %v20_v8 = vld [vmem:[%s411_s0] sm:$0xff]  ;;  %v116_v12 = vld [vmem:[%s410_s3 + $0x48] sm:$0xff]  ;;  %v114_v14 = vld [vmem:[%s410_s3 + $0x38] sm:$0xff] }
   0x5   :  { %235 = vmatprep.subr.mxu0 %v281_v0  ;;  %245 = vmatpush3.msra.mxu1 %v121_v5  ;;  %v119_v9 = vld [vmem:[%s410_s3 + $0x60] sm:$0xff]  ;;  %v113_v15 = vld [vmem:[%s410_s3 + $0x30] sm:$0xff]  ;;  %v112_v16 = vld [vmem:[%s410_s3 + $0x28] sm:$0xff] }
   0x6   :  { %236 = vmatpush3.msra.mxu0 %v22_v4  ;;  %246 = vmatprep.subr.mxu1 %v281_v0  ;;  %v115_v13 = vld [vmem:[%s410_s3 + $0x40] sm:$0xff]  ;;  %v110_v18 = vld [vmem:[%s410_s3 + $0x18] sm:$0xff]  ;;  %v109_v19 = vld [vmem:[%s410_s3 + $0x10] sm:$0xff] }
   0x7   :  { %237 = vmatprep.subr.mxu0 %v281_v0  ;;  %247 = vmatpush3.msra.mxu1 %v120_v6  ;;  %v111_v17 = vld [vmem:[%s410_s3 + $0x20] sm:$0xff]  ;;  %v108_v20 = vld [vmem:[%s410_s3 + $0x8] sm:$0xff] }
   0x8   :  { %238 = vmatpush3.msra.mxu0 %v21_v7  ;;  %248 = vmatprep.subr.mxu1 %v281_v0  ;;  %v107_v21 = vld [vmem:[%s410_s3] sm:$0xff] }
   0x9   :  { %240 = vmatmul.mubr.msk.f32.vlgmr.msra.gmra.mxu0 %vm32_vm1, %v20_v8  ;;  %249 = vmatpush3.msra.mxu1 %v119_v9  ;;  %v206_v22 = vld [vmem:[%s412_s2] ss:$0 sm:$0xff] }
   0xa   :  { %250 = vmatprep.subr.mxu1 %v281_v0  ;;  %274 = vmatprep.mubr.msk.f32.mxu1 %vm282_vm0, %v281_v0  ;;  %v208_v27 = vld [vmem:[%s413_s4] ss:$0 sm:$0xff] }
   0xb   :  { %251 = vmatpush3.msra.mxu1 %v118_v10 }
   0xc   :  { %252 = vmatprep.subr.mxu1 %v281_v0 }
   0xd   :  { %253 = vmatpush3.msra.mxu1 %v117_v11 }
   0xe   :  { %254 = vmatprep.subr.mxu1 %v281_v0 }
   0xf   :  { %255 = vmatpush3.msra.mxu1 %v116_v12 }
  0x10   :  { %256 = vmatprep.subr.mxu1 %v281_v0 }
  0x11   :  { %257 = vmatpush3.msra.mxu1 %v115_v13 }
  0x12   :  { %258 = vmatprep.subr.mxu1 %v281_v0 }
  0x13   :  { %259 = vmatpush3.msra.mxu1 %v114_v14 }
  0x14   :  { %260 = vmatprep.subr.mxu1 %v281_v0 }
  0x15   :  { %261 = vmatpush3.msra.mxu1 %v113_v15 }
  0x16   :  { %262 = vmatprep.subr.mxu1 %v281_v0 }
  0x17   :  { %263 = vmatpush3.msra.mxu1 %v112_v16 }
  0x18   :  { %264 = vmatprep.subr.mxu1 %v281_v0 }
  0x19   :  { %265 = vmatpush3.msra.mxu1 %v111_v17 }
  0x1a   :  { %266 = vmatprep.subr.mxu1 %v281_v0 }
  0x1b   :  { %267 = vmatpush3.msra.mxu1 %v110_v18 }
  0x1c   :  { %268 = vmatprep.subr.mxu1 %v281_v0 }
  0x1d   :  { %269 = vmatpush3.msra.mxu1 %v109_v19 }
  0x1e   :  { %270 = vmatprep.subr.mxu1 %v281_v0 }
  0x1f   :  { %271 = vmatpush3.msra.mxu1 %v108_v20 }
  0x20   :  { %272 = vmatprep.subr.mxu1 %v281_v0 }
  0x21   :  { %273 = vmatpush3.msra.mxu1 %v107_v21 }
  0xc9   :  { %v102_v23 = vpop.f32.mrf.mxu0 }
  0xca   :  { %v103_v24 = vadd.f32 %v206_v22, %v102_v23 }
  0xcb   :  { %v241_v25 = vpop.f32.mrf.mxu0 }
  0xcc   :  { %279 = vtanh.f32 %v103_v24 }
  0xd9   :  { %v280_v26 = vpop.eup %279 }
  0xda   :  { %275 = vmatmul.mubr.f32.vlgmr.msra.gmra.mxu1 %v280_v26 }
 0x19a   :  { %v196_v28 = vpop.f32.mrf.mxu1 }
 0x19b   :  { %v197_v29 = vadd.f32 %v208_v27, %v196_v28 }
 0x19c   :  { %v276_v30 = vpop.f32.mrf.mxu1 }
 0x19d   :  { %201 = vst.msk [vmem:[%s414_s5] sm:$0xff] %vm200_vm2, %v197_v29 }

</bundles_post_ra>
